<compile_context>
chip_gen: v7x
topology: tpu7x:2x2x1
jax: 0.10.0
libtpu: 0.0.40
codegen_flags: <defaults>
</compile_context>

<pallas_src>
import jax
import jax.numpy as jnp
from jax.experimental import pallas as pl
from jax.experimental.pallas import tpu as pltpu

# CLIP normalization constants (from the module __init__)
_MEAN = (0.48145466, 0.4578275, 0.40821073)
_STD = (0.26862954, 0.26130258, 0.27577711)
_INV_STD = tuple(1.0 / s for s in _STD)
_NEG_MEAN_INV_STD = tuple(-m / s for m, s in zip(_MEAN, _STD))


def _patch_attack_kernel(img_ref, uap_ref, mask_ref, inv_std_ref, neg_mu_ref, out_ref):
    # img_ref/uap_ref/mask_ref/out_ref: (C, T); inv_std_ref/neg_mu_ref: (C, 1)
    img = img_ref[...].astype(jnp.float32)
    uap = uap_ref[...].astype(jnp.float32)
    mask = mask_ref[...].astype(jnp.float32)
    adv = (1.0 - mask) * img + uap * mask
    adv = jnp.clip(adv, 0.0, 1.0)
    # Normalize as one FMA: adv * (1/std) + (-mean/std)
    out_ref[...] = (adv * inv_std_ref[...] + neg_mu_ref[...]).astype(out_ref.dtype)


def _pixel_attack_kernel(img_ref, uap_ref, inv_std_ref, neg_mu_ref, out_ref):
    adv = img_ref[...].astype(jnp.float32) + uap_ref[...].astype(jnp.float32)
    adv = jnp.clip(adv, 0.0, 1.0)
    out_ref[...] = (adv * inv_std_ref[...] + neg_mu_ref[...]).astype(out_ref.dtype)


def _pick_tile(hw, bytes_per_lane, target_bytes=2 << 20, max_bytes=4 << 20):
    """Pick T (multiple of 128 dividing hw, hw % 128 == 0).

    Prefers per-step payloads near `target_bytes` (and <= max_bytes) and an EVEN
    number of h steps (balanced v7x megacore split; 1 step is also acceptable).
    """
    assert hw % 128 == 0
    cands = [t for t in range(128, hw + 1, 128) if hw % t == 0]

    def key(t):
        steps = hw // t
        payload = t * bytes_per_lane
        over = payload > max_bytes
        odd = (steps % 2 != 0) and steps != 1
        return (over, odd, abs(payload - target_bytes))

    return min(cands, key=key)


def anydoor_pixel_values(img_ori, uap, uap_mask=None, *, patch_attack=True):
    """Normalized adversarial pixel values (bf16), NOT_SSA path.

    img_ori:  (B, C, HW) float (f32 or bf16), values in [0, 1]
    uap:      (C, HW)    float (learnable UAP parameter)
    uap_mask: (C, HW)    float/bf16 binary mask (required when patch_attack=True)
    returns:  (B, C, HW) bfloat16
    """
    B, C, HW = img_ori.shape
    assert C == 3, "CLIP normalization constants are per-RGB-channel"

    # Pad HW to a multiple of 128: keeps lane-dense stores + deep pipelining for
    # any resolution instead of one giant masked full-extent block.
    pad = (-HW) % 128
    HWp = HW + pad
    if pad:
        img_ori = jnp.pad(img_ori, ((0, 0), (0, 0), (0, pad)))
        uap = jnp.pad(uap, ((0, 0), (0, pad)))
        if uap_mask is not None:
            uap_mask = jnp.pad(uap_mask, ((0, 0), (0, pad)))

    isz = lambda x: jnp.dtype(x.dtype).itemsize
    bytes_per_lane = C * (isz(img_ori) + isz(uap) + 2)  # +2 for bf16 output
    if patch_attack:
        if uap_mask is None:
            raise ValueError("patch_attack=True requires uap_mask")
        bytes_per_lane += C * isz(uap_mask)

    T = _pick_tile(HWp, bytes_per_lane)
    grid = (HWp // T, B)  # h first ("parallel"), b innermost ("arbitrary")

    inv_std = jnp.asarray(_INV_STD, dtype=jnp.float32).reshape(C, 1)
    neg_mu = jnp.asarray(_NEG_MEAN_INV_STD, dtype=jnp.float32).reshape(C, 1)

    img_spec = pl.BlockSpec((None, C, T), lambda h, b: (b, 0, h))   # squeezed batch dim
    chan_spec = pl.BlockSpec((C, T), lambda h, b: (0, h))           # reused across b
    const_spec = pl.BlockSpec((C, 1), lambda h, b: (0, 0))          # fetched once
    out_spec = pl.BlockSpec((None, C, T), lambda h, b: (b, 0, h))

    mask_bytes = isz(uap_mask) if patch_attack else 0
    cost = pl.CostEstimate(
        flops=int(B) * C * HWp * 6,
        transcendentals=0,
        bytes_accessed=int(B * C * HWp * (isz(img_ori) + 2)
                           + C * HWp * (isz(uap) + mask_bytes)),
    )

    if patch_attack:
        kernel = _patch_attack_kernel
        in_specs = [img_spec, chan_spec, chan_spec, const_spec, const_spec]
        operands = (img_ori, uap, uap_mask, inv_std, neg_mu)
    else:
        kernel = _pixel_attack_kernel
        in_specs = [img_spec, chan_spec, const_spec, const_spec]
        operands = (img_ori, uap, inv_std, neg_mu)

    out = pl.pallas_call(
        kernel,
        out_shape=jax.ShapeDtypeStruct((B, C, HWp), jnp.bfloat16),
        grid=grid,
        in_specs=in_specs,
        out_specs=out_spec,
        compiler_params=pltpu.CompilerParams(
            dimension_semantics=("parallel", "arbitrary")),
        cost_estimate=cost,
    )(*operands)

    if pad:
        out = out[:, :, :HW]
    return out


def _reference(img_ori, uap, uap_mask, patch_attack):
    img = img_ori.astype(jnp.float32)
    u = uap.astype(jnp.float32)
    if patch_attack:
        m = uap_mask.astype(jnp.float32)
        adv = (1.0 - m)[None] * img + (u * m)[None]
    else:
        adv = img + u[None]
    adv = jnp.clip(adv, 0.0, 1.0)
    mean = jnp.array(_MEAN, jnp.float32).reshape(1, 3, 1)
    std = jnp.array(_STD, jnp.float32).reshape(1, 3, 1)
    return ((adv - mean) / std).astype(jnp.bfloat16)


if __name__ == "__main__":
    key = jax.random.PRNGKey(0)

    # Two small configurations: one 128-divisible HW, one that exercises the
    # wrapper-side padding path (real module uses 336x336 -> HW=112896, T=56448).
    for (B, C, H, W) in ((2, 3, 16, 16), (2, 3, 10, 10)):
        HW = H * W
        k1, k2, _ = jax.random.split(key, 3)
        img_ori_nchw = jax.random.uniform(k1, (B, C, H, W), jnp.float32)   # image in [0,1]
        uap_nchw = 0.05 * jax.random.normal(k2, (C, H, W), jnp.float32)    # learnable UAP
        # static binary patch mask, stored persistently in bf16 (narrow HBM stream)
        mask_nchw = jnp.zeros((C, H, W), jnp.bfloat16).at[:, :H // 2, :W // 2].set(1.0)

        # layout: flatten NCHW spatial dims -> (B, C, H*W), lane-dense for the kernel
        img_ori = img_ori_nchw.reshape(B, C, HW)
        uap = uap_nchw.reshape(C, HW)
        uap_mask = mask_nchw.reshape(C, HW)

        for patch_attack in (True, False):
            out = anydoor_pixel_values(img_ori, uap, uap_mask,
                                       patch_attack=patch_attack)
            out = jax.block_until_ready(out)
            ref = _reference(img_ori, uap, uap_mask, patch_attack)
            assert out.shape == (B, C, HW) and out.dtype == jnp.bfloat16
            assert jnp.allclose(out.astype(jnp.float32), ref.astype(jnp.float32),
                                atol=2e-2, rtol=2e-2)

    print("KERNEL_OK")
</pallas_src>

<mosaic_0001>
module attributes {stable_mosaic.version = 11 : i64} {
  func.func @_patch_attack_kernel(%arg0: i32, %arg1: i32, %arg2: memref<1x3x256xf32, #tpu.memory_space<vmem>>, %arg3: memref<3x256xf32, #tpu.memory_space<vmem>>, %arg4: memref<3x256xbf16, #tpu.memory_space<vmem>>, %arg5: memref<3x1xf32, #tpu.memory_space<vmem>>, %arg6: memref<3x1xf32, #tpu.memory_space<vmem>>, %arg7: memref<1x3x256xbf16, #tpu.memory_space<vmem>>) attributes {dimension_semantics = [#tpu.dimension_semantics<parallel>, #tpu.dimension_semantics<arbitrary>], iteration_bounds = array<i64: 1, 2>, scalar_prefetch = 0 : i64, scratch_operands = 0 : i64, tpu.core_type = #tpu.core_type<tc>, window_params = [{transform_indices = @transform_0, window_bounds = array<i64: 1, 3, 256>}, {transform_indices = @transform_1, window_bounds = array<i64: 3, 256>}, {transform_indices = @transform_2, window_bounds = array<i64: 3, 256>}, {pipeline_mode = #tpu.pipeline_mode<synchronous>, transform_indices = @transform_3, window_bounds = array<i64: 3, 1>}, {pipeline_mode = #tpu.pipeline_mode<synchronous>, transform_indices = @transform_4, window_bounds = array<i64: 3, 1>}, {transform_indices = @transform_5, window_bounds = array<i64: 1, 3, 256>}]} {
    %c0 = arith.constant 0 : index
    %c0_0 = arith.constant 0 : index
    %c0_1 = arith.constant 0 : index
    %0 = vector.load %arg2[%c0, %c0_0, %c0_1] : memref<1x3x256xf32, #tpu.memory_space<vmem>>, vector<1x3x256xf32>
    %1 = vector.shape_cast %0 : vector<1x3x256xf32> to vector<3x256xf32>
    %c0_2 = arith.constant 0 : index
    %c0_3 = arith.constant 0 : index
    %2 = vector.load %arg3[%c0_2, %c0_3] : memref<3x256xf32, #tpu.memory_space<vmem>>, vector<3x256xf32>
    %c0_4 = arith.constant 0 : index
    %c0_5 = arith.constant 0 : index
    %3 = vector.load %arg4[%c0_4, %c0_5] : memref<3x256xbf16, #tpu.memory_space<vmem>>, vector<3x256xbf16>
    %4 = arith.extf %3 : vector<3x256xbf16> to vector<3x256xf32>
    %cst = arith.constant 1.000000e+00 : f32
    %5 = vector.broadcast %cst : f32 to vector<3x256xf32>
    %6 = arith.subf %5, %4 : vector<3x256xf32>
    %7 = arith.mulf %6, %1 : vector<3x256xf32>
    %8 = arith.mulf %2, %4 : vector<3x256xf32>
    %9 = arith.addf %7, %8 : vector<3x256xf32>
    %cst_6 = arith.constant 0.000000e+00 : f32
    %cst_7 = arith.constant 1.000000e+00 : f32
    %10 = vector.broadcast %cst_6 : f32 to vector<3x256xf32>
    %11 = arith.maximumf %10, %9 : vector<3x256xf32>
    %12 = vector.broadcast %cst_7 : f32 to vector<3x256xf32>
    %13 = arith.minimumf %12, %11 : vector<3x256xf32>
    %c0_8 = arith.constant 0 : index
    %c0_9 = arith.constant 0 : index
    %14 = vector.load %arg5[%c0_8, %c0_9] : memref<3x1xf32, #tpu.memory_space<vmem>>, vector<3x1xf32>
    %15 = vector.broadcast %14 : vector<3x1xf32> to vector<3x256xf32>
    %16 = arith.mulf %13, %15 : vector<3x256xf32>
    %c0_10 = arith.constant 0 : index
    %c0_11 = arith.constant 0 : index
    %17 = vector.load %arg6[%c0_10, %c0_11] : memref<3x1xf32, #tpu.memory_space<vmem>>, vector<3x1xf32>
    %18 = vector.broadcast %17 : vector<3x1xf32> to vector<3x256xf32>
    %19 = arith.addf %16, %18 : vector<3x256xf32>
    %20 = arith.truncf %19 : vector<3x256xf32> to vector<3x256xbf16>
    %c0_12 = arith.constant 0 : index
    %c0_13 = arith.constant 0 : index
    %c0_14 = arith.constant 0 : index
    %21 = vector.load %arg7[%c0_12, %c0_13, %c0_14] : memref<1x3x256xbf16, #tpu.memory_space<vmem>>, vector<1x3x256xbf16>
    %22 = vector.shape_cast %21 : vector<1x3x256xbf16> to vector<3x256xbf16>
    %23 = vector.shape_cast %20 : vector<3x256xbf16> to vector<1x3x256xbf16>
    tpu.vector_store %arg7[%c0_12, %c0_13, %c0_14], %23 {strides = array<i32>} : memref<1x3x256xbf16, #tpu.memory_space<vmem>>, vector<1x3x256xbf16>,
    return
  }
  func.func @transform_0(%arg0: i32, %arg1: i32) -> (i32, i32, i32) {
    %c0_i32 = arith.constant 0 : i32
    %c0_i32_0 = arith.constant 0 : i32
    return %arg1, %c0_i32, %arg0 : i32, i32, i32
  }
  func.func @transform_1(%arg0: i32, %arg1: i32) -> (i32, i32) {
    %c0_i32 = arith.constant 0 : i32
    %c0_i32_0 = arith.constant 0 : i32
    return %c0_i32, %arg0 : i32, i32
  }
  func.func @transform_2(%arg0: i32, %arg1: i32) -> (i32, i32) {
    %c0_i32 = arith.constant 0 : i32
    %c0_i32_0 = arith.constant 0 : i32
    return %c0_i32, %arg0 : i32, i32
  }
  func.func @transform_3(%arg0: i32, %arg1: i32) -> (i32, i32) {
    %c0_i32 = arith.constant 0 : i32
    %c0_i32_0 = arith.constant 0 : i32
    %c0_i32_1 = arith.constant 0 : i32
    return %c0_i32, %c0_i32_0 : i32, i32
  }
  func.func @transform_4(%arg0: i32, %arg1: i32) -> (i32, i32) {
    %c0_i32 = arith.constant 0 : i32
    %c0_i32_0 = arith.constant 0 : i32
    %c0_i32_1 = arith.constant 0 : i32
    return %c0_i32, %c0_i32_0 : i32, i32
  }
  func.func @transform_5(%arg0: i32, %arg1: i32) -> (i32, i32, i32) {
    %c0_i32 = arith.constant 0 : i32
    %c0_i32_0 = arith.constant 0 : i32
    return %arg1, %c0_i32, %arg0 : i32, i32, i32
  }
}

</mosaic_0001>

<bundles_post_ra>
// kernel: tpu_custom_call.1
= control target key start
LH: loop header
LB: loop body
LE: loop exit
PB: predicated region body
PF: predicated region fallthrough
CT: control target
= control target key end

     0   :  { %s590_s18 = smov 0   ;;  %s592_s19 = smov 0   ;;  %s639_s0 = inlined_call_operand.vmem [shape: f32[2,3,256], index: 0, kind: input, shape index: {}]   ;;  %s640_s1 = inlined_call_operand.vmem [shape: f32[3,256], index: 1, kind: input, shape index: {}]   ;;  %s641_s2 = inlined_call_operand.vmem [shape: bf16[3,256], index: 2, kind: input, shape index: {}]   ;;  %s642_s3 = inlined_call_operand.vmem [shape: f32[3,1], index: 3, kind: input, shape index: {}]   ;;  %s643_s4 = inlined_call_operand.vmem [shape: f32[3,1], index: 4, kind: input, shape index: {}]   ;;  %s644_s5 = inlined_call_operand.vmem [shape: bf16[2,3,256], index: 5, kind: output, shape index: {}]  }
   0x1   :  { %s594_s20 = smov 0  }
   0x2 LB: > { %s24_s21 = sadd.s32 1, %s551_s19  ;;  %p495_p0 = scmp.ge.s32.totalorder %s555_s20, 1  ;;  %s555_s20 = sphi %s594_s20, %s15_s20   ;;  %s551_s19 = sphi %s592_s19, %s646_s19   ;;  %s547_s18 = sphi %s590_s18, %s645_s18  }
   0x3   : > { %p25_p1 = scmp.ge.s32.totalorder %s24_s21, 2  ;;  %p230_p2 = scmp.lt.s32.totalorder %s555_s20, 3 }
   0x5   : > { %s648_s21 = smov (%p25_p1, %s24_s21), 0  ;;  %p231_p3 = pnand %p495_p0, %p230_p2 }
   0x6   : > { %v318_v0 = vld [vmem:[%s642_s3] sm:$0x7] (!%p231_p3)  ;;  %v557_v1 = vmov (!%p231_p3), 0   ;;  %p277_p4 = scmp.lt.s32.totalorder (!%p231_p3), %s547_s18, 1  ;;  %v558_v8 = vmov (!%p231_p3), 839922192   ;;  %v326_v10 = vlaneseq (!%p231_p3) }
   0x7   : > { %234 = sbr.rel (%p231_p3) target bundleno = 152 (0x98), region = 40  ;;  %532 = vset.pattern.permute.xlu0 (!%p231_p3), %v557_v1  ;;  %v332_v2 = vld [vmem:[%s643_s4] sm:$0x7] (!%p231_p3)  ;;  %v324_v9 = vunpack.c.l.s4 (!%p231_p3), %v558_v8  ;;  %v559_v18 = vmov (!%p231_p3), 1983009808   ;;  %vm362_vm0 = vcmask (!%p231_p3), 1041408  }
   0x8   : > { %321 = vperm.xlu0 (!%p231_p3), %532, %v318_v0   ;;  %v310_v3 = vld [vmem:[%s641_s2] sm:$0xf] (!%p231_p3)  ;;  %v327_v14 = vshrl.u32 (!%p231_p3), %v326_v10, 7  ;;  %v355_v19 = vunpack.c.l.s4 (!%p231_p3), %v559_v18  ;;  %vm363_vm1 = vsmask.f32 (!%p231_p3), 1280  ;;  %vm365_vm2 = vcmask (!%p231_p3), 1043458  }
   0x9   : > { %v311_v4 = vunpack.c.l.bf16 (!%p231_p3), %v310_v3  ;;  %v309_v7 = vld [vmem:[%s640_s1] sm:$0x77] (!%p231_p3)  ;;  %v325_v13 = vunpack.c.0.s8 (!%p231_p3), %v324_v9  ;;  %vm366_vm3 = vsmask.f32 (!%p231_p3), 3328  ;;  %vm364_vm4 = vmand (!%p231_p3), %vm362_vm0, %vm363_vm1 }
   0xa   : > { %v356_v23 = vunpack.c.0.s8 (!%p231_p3), %v355_v19  ;;  %vm367_vm5 = vmand (!%p231_p3), %vm365_vm2, %vm366_vm3 }
   0xb   : > { %v312_v5 = vsub.f32 (!%p231_p3), 1.0, %v311_v4  ;;  %v314_v12 = vmul.f32 (!%p231_p3), %v311_v4, %v309_v7  ;;  %v328_v16 = vsub.s32 (!%p231_p3), %v325_v13, %v327_v14  ;;  %vm368_vm6 = vmor (!%p231_p3), %vm367_vm5, %vm364_vm4 }
   0xc   : > { %335 = vperm.xlu0 (!%p231_p3), %532, %v332_v2   ;;  %v359_v28 = vsub.s32 (!%p231_p3), %v356_v23, %v327_v14 }
   0xe   : > { %s650_s18 = smov (!%p277_p4, %s547_s18), 1 }
   0xf   : > { %s503_s28 = sshll.u32 %s650_s18, 3  ;;  %s504_s9 = sshll.u32 %s650_s18, 2 }
  0x10   : > { %s284_s6 = scalar_lea.vmem %s639_s0, %s503_s28  ;;  %s306_s12 = scalar_lea.vmem %s644_s5, %s504_s9 }
  0x11   : > { %v308_v6 = vld [vmem:[%s284_s6] sm:$0x77] }
  0x12   : > { %v313_v11 = vmul.f32 %v312_v5, %v308_v6  ;;  %v369_v31 = vld [vmem:[%s306_s12] sm:$0xf] }
  0x14   : > { %v315_v15 = vadd.f32 %v314_v12, %v313_v11 }
  0x16   : > { %v316_v17 = vmax.f32 %v315_v15, 0.0 }
  0x18   : > { %v317_v21 = vmin.f32 %v316_v17, 1.0 }
  0x87   : > { %v322_v20 = vpop.permute.xlu0 %321 }
  0x88   : > { %v329_v22 = vrot.slane %v322_v20, %v328_v16 }
  0x8a   : > { %v331_v25 = vmul.f32 %v329_v22, %v317_v21 }
  0x8b   : > { %v336_v24 = vpop.permute.xlu0 %335 }
  0x8c   : > { %v343_v26 = vrot.slane %v336_v24, %v328_v16 }
  0x8e   : > { %v345_v27 = vadd.f32 %v343_v26, %v331_v25 }
  0x90   : > { %v347_v29 = vcombine.high %v345_v27, %v345_v27 }
  0x92   : > { %v500_v30 = vpack.c.bf16 %v347_v29, %v345_v27 }
  0x94   : > { %v360_v32 = vrot.slane %v500_v30, %v359_v28 }
  0x96   : > { %v370_v33 = vsel %vm368_vm6, %v360_v32, %v369_v31 }
  0x97   : > { %371 = vst [vmem:[%s306_s12] sm:$0xf] %v370_v33 }
  0x98 PF: > { %s15_s20 = sadd.s32 1, %s555_s20   ;;  %s645_s18 = smov %s551_s19 }
  0x99   : > { %p12_p5 = scmp.ge.s32.totalorder %s15_s20, 4   ;;  %s646_s19 = smov %s648_s21 }
  0x9b   :  { %14 = sbr.rel (!%p12_p5) target bundleno = 2 (0x2), region = 76 }

</bundles_post_ra>
